<compile_context>
chip_gen: v7x
topology: tpu7x:2x2x1
jax: 0.10.0
libtpu: 0.0.40
codegen_flags: <defaults>
</compile_context>

<pallas_src>
import math

import jax
import jax.numpy as jnp
from jax.experimental import pallas as pl
from jax.experimental.pallas import tpu as pltpu


def pos_encoder_kernel(x_ref, pe_ref, o_ref):
    # x_ref/o_ref: (bt, ts, d_model)  (or (bt, L) in the flattened path)
    # pe_ref     : (ts, d_model)      (or (1, L)) -- broadcasts over the batch
    o_ref[...] = x_ref[...] + pe_ref[...]


def make_positional_encoding(max_len, d_model, dtype=jnp.float32):
    """Standard transformer sin/cos table, shape (max_len, d_model)."""
    position = jnp.arange(max_len, dtype=jnp.float32)[:, None]            # (L, 1)
    div_term = jnp.exp(
        jnp.arange(0, d_model, 2, dtype=jnp.float32)
        * (-math.log(10000.0) / d_model))                                 # (ceil(d/2),)
    angles = position * div_term                                          # (L, ceil(d/2))
    pe = jnp.zeros((max_len, d_model), jnp.float32)
    pe = pe.at[:, 0::2].set(jnp.sin(angles))
    pe = pe.at[:, 1::2].set(jnp.cos(angles[:, : d_model // 2]))           # odd d_model safe
    return pe.astype(dtype)


def _sublane_pack(itemsize):
    return {1: 32, 2: 16}.get(itemsize, 8)


def _pick_tiles(batch, seq, d_model, itemsize, target_block_bytes):
    """Choose (bt, ts): rows-per-block targeting ~target_block_bytes so DMAs are
    large (near-roofline) but the double-buffered working set stays well inside
    every generation's scoped VMEM budget."""
    sub = _sublane_pack(itemsize)
    row_bytes = d_model * itemsize
    want_rows = max(1, target_block_bytes // row_bytes)

    divs = [d for d in range(1, seq + 1) if seq % d == 0]
    ts = None
    for d in reversed(divs):                       # largest first
        if d <= want_rows and (d % sub == 0 or d == seq):
            ts = d
            break
    if ts is None:
        for d in reversed(divs):
            if d <= want_rows:
                ts = d
                break
    if ts is None:
        ts = divs[0]

    # If one block already covers the whole sequence and is still small, fold
    # several batch elements into the block to amortize per-step overhead.
    bt = 1
    if ts == seq:
        blk = ts * row_bytes
        for d in range(batch, 0, -1):
            if batch % d == 0 and d * blk <= max(target_block_bytes, blk):
                bt = d
                break
    return bt, ts


def pos_encoder(x, pe, *, target_block_bytes=2 << 20, vmem_limit_bytes=32 << 20):
    """x: (batch, seq, d_model); pe: (max_len, d_model) sin/cos table.
    Returns x + pe[:seq] broadcast over batch (dropout == identity, eval mode)."""
    batch, seq, d_model = x.shape
    assert pe.ndim == 2 and pe.shape[0] >= seq and pe.shape[1] == d_model

    # Slice to the rows actually used; cast only if needed (no-op when the
    # table was already built in x.dtype at module init).
    pe_s = pe[:seq] if pe.shape[0] != seq else pe
    if pe_s.dtype != x.dtype:
        pe_s = pe_s.astype(x.dtype)
    itemsize = jnp.dtype(x.dtype).itemsize

    # Accurate traffic: x read + out write + pe read ONCE (per-seq-tile reuse).
    cost = pl.CostEstimate(
        flops=batch * seq * d_model,
        transcendentals=0,
        bytes_accessed=(2 * x.size + pe_s.size) * itemsize,
    )

    # ---- Lane-dense fallback: d_model not a multiple of 128 -> flatten the
    # (seq, d_model) slab into the lane axis so stores are unmasked. ----------
    if d_model % 128 != 0 and seq * d_model * itemsize <= target_block_bytes:
        L = seq * d_model
        xf = x.reshape(batch, L)
        pef = pe_s.reshape(1, L)
        blk = L * itemsize
        sub = _sublane_pack(itemsize)
        bt = 1
        for d in range(batch, 0, -1):          # bt must be batch or sublane-aligned
            if batch % d == 0 and (d == batch or d % sub == 0) \
                    and d * blk <= max(target_block_bytes, blk):
                bt = d
                break
        out = pl.pallas_call(
            pos_encoder_kernel,
            out_shape=jax.ShapeDtypeStruct((batch, L), x.dtype),
            grid_spec=pltpu.PrefetchScalarGridSpec(
                num_scalar_prefetch=0,
                grid=(batch // bt,),
                in_specs=[
                    pl.BlockSpec((bt, L), lambda b: (b, 0)),
                    pl.BlockSpec((1, L), lambda b: (0, 0)),   # pe resident (fetched once)
                ],
                out_specs=pl.BlockSpec((bt, L), lambda b: (b, 0)),
            ),
            compiler_params=pltpu.CompilerParams(
                dimension_semantics=("parallel",),
                vmem_limit_bytes=vmem_limit_bytes),
            cost_estimate=cost,
        )(xf, pef)
        return out.reshape(batch, seq, d_model)

    # ---- Main path: lane axis = d_model (multiple of 128). ------------------
    bt, ts = _pick_tiles(batch, seq, d_model, itemsize, target_block_bytes)
    n_b, n_s = batch // bt, seq // ts

    if n_s >= 2:
        # Batch innermost => pe block index changes only when the seq tile
        # changes: each pe row-tile is DMA'd exactly once.
        grid = (n_s, n_b)
        x_map = lambda s, b: (b, s, 0)
        pe_map = lambda s, b: (s, 0)
    else:
        # Single seq tile: pe index is constant anyway; lead with batch so the
        # leading parallel axis is >= 2 for v7x's two TensorCores.
        grid = (n_b, n_s)
        x_map = lambda b, s: (b, s, 0)
        pe_map = lambda b, s: (s, 0)

    out = pl.pallas_call(
        pos_encoder_kernel,
        out_shape=jax.ShapeDtypeStruct((batch, seq, d_model), x.dtype),
        grid_spec=pltpu.PrefetchScalarGridSpec(
            num_scalar_prefetch=0,
            grid=grid,
            in_specs=[
                pl.BlockSpec((bt, ts, d_model), x_map),
                pl.BlockSpec((ts, d_model), pe_map),
            ],
            out_specs=pl.BlockSpec((bt, ts, d_model), x_map),
        ),
        compiler_params=pltpu.CompilerParams(
            dimension_semantics=("parallel", "parallel"),
            vmem_limit_bytes=vmem_limit_bytes),
        cost_estimate=cost,
    )(x, pe_s)
    return out


if __name__ == "__main__":
    key = jax.random.PRNGKey(0)

    # Main path: d_model multiple of 128 (lane-dense).
    batch, seq, d_model, max_len = 2, 8, 128, 16
    x = jax.random.normal(key, (batch, seq, d_model), jnp.float32)
    pe = make_positional_encoding(max_len, d_model, jnp.float32)   # built once, x.dtype
    out = jax.block_until_ready(pos_encoder(x, pe))
    ref = x + pe[None, :seq, :]
    assert out.shape == (batch, seq, d_model)
    assert jnp.allclose(out, ref, atol=1e-6, rtol=1e-6)

    # Fallback path: d_model not a multiple of 128 (flattened lane axis).
    d_model2 = 64
    x2 = jax.random.normal(jax.random.PRNGKey(1), (batch, seq, d_model2), jnp.float32)
    pe2 = make_positional_encoding(max_len, d_model2, jnp.float32)
    out2 = jax.block_until_ready(pos_encoder(x2, pe2))
    ref2 = x2 + pe2[None, :seq, :]
    assert jnp.allclose(out2, ref2, atol=1e-6, rtol=1e-6)

    print("KERNEL_OK")
</pallas_src>

<mosaic_0001>
module attributes {stable_mosaic.version = 11 : i64} {
  func.func @pos_encoder_kernel(%arg0: i32, %arg1: i32, %arg2: memref<2x8x128xf32, #tpu.memory_space<vmem>>, %arg3: memref<8x128xf32, #tpu.memory_space<vmem>>, %arg4: memref<2x8x128xf32, #tpu.memory_space<vmem>>) attributes {dimension_semantics = [#tpu.dimension_semantics<parallel>, #tpu.dimension_semantics<parallel>], iteration_bounds = array<i64: 1, 1>, scalar_prefetch = 0 : i64, scratch_operands = 0 : i64, tpu.core_type = #tpu.core_type<tc>, window_params = [{transform_indices = @transform_0, window_bounds = array<i64: 2, 8, 128>}, {transform_indices = @transform_1, window_bounds = array<i64: 8, 128>}, {transform_indices = @transform_2, window_bounds = array<i64: 2, 8, 128>}]} {
    %c0 = arith.constant 0 : index
    %c0_0 = arith.constant 0 : index
    %c0_1 = arith.constant 0 : index
    %0 = vector.load %arg2[%c0, %c0_0, %c0_1] : memref<2x8x128xf32, #tpu.memory_space<vmem>>, vector<2x8x128xf32>
    %c0_2 = arith.constant 0 : index
    %c0_3 = arith.constant 0 : index
    %1 = vector.load %arg3[%c0_2, %c0_3] : memref<8x128xf32, #tpu.memory_space<vmem>>, vector<8x128xf32>
    %2 = vector.shape_cast %1 : vector<8x128xf32> to vector<1x8x128xf32>
    %3 = vector.broadcast %2 : vector<1x8x128xf32> to vector<2x8x128xf32>
    %4 = arith.addf %0, %3 : vector<2x8x128xf32>
    %c0_4 = arith.constant 0 : index
    %c0_5 = arith.constant 0 : index
    %c0_6 = arith.constant 0 : index
    %5 = vector.load %arg4[%c0_4, %c0_5, %c0_6] : memref<2x8x128xf32, #tpu.memory_space<vmem>>, vector<2x8x128xf32>
    tpu.vector_store %arg4[%c0_4, %c0_5, %c0_6], %4 {strides = array<i32>} : memref<2x8x128xf32, #tpu.memory_space<vmem>>, vector<2x8x128xf32>,
    return
  }
  func.func @transform_0(%arg0: i32, %arg1: i32) -> (i32, i32, i32) {
    %c0_i32 = arith.constant 0 : i32
    %c0_i32_0 = arith.constant 0 : i32
    return %arg0, %arg1, %c0_i32 : i32, i32, i32
  }
  func.func @transform_1(%arg0: i32, %arg1: i32) -> (i32, i32) {
    %c0_i32 = arith.constant 0 : i32
    %c0_i32_0 = arith.constant 0 : i32
    return %arg1, %c0_i32 : i32, i32
  }
  func.func @transform_2(%arg0: i32, %arg1: i32) -> (i32, i32, i32) {
    %c0_i32 = arith.constant 0 : i32
    %c0_i32_0 = arith.constant 0 : i32
    return %arg0, %arg1, %c0_i32 : i32, i32, i32
  }
}

</mosaic_0001>

<bundles_post_ra>
// kernel: tpu_custom_call.1
= control target key start
LH: loop header
LB: loop body
LE: loop exit
PB: predicated region body
PF: predicated region fallthrough
CT: control target
= control target key end

     0   :  { %7 = vsyncpa [#allocation3], 0  ;;  %s202_s0 = inlined_call_operand.hbm [shape: f32[2,8,128], index: 0, kind: input, shape index: {}]   ;;  %s203_s1 = inlined_call_operand.hbm [shape: f32[8,128], index: 1, kind: input, shape index: {}]   ;;  %s204_s2 = inlined_call_operand.hbm [shape: f32[2,8,128], index: 2, kind: output, shape index: {}]  }
   0x1   :  { %8 = vsyncpa [#allocation6], 0 }
   0x2   :  { %9 = vsyncpa [#allocation4], 0  ;;  %s140_s9 = smov [#allocation2]   ;;  %s68_s13 = scalar_lea.hbm %s202_s0, 256 }
   0x3   :  { %s15_s10 = sshll.u32 %s140_s9, 4  ;;  %p69_p0 = scmp.ne.s32.totalorder %s202_s0, %s68_s13  ;;  %s16_s10 = int_to_ptr.vmem [resolvable:$true] %s15_s10 }
   0x4   :  { %p72_p1 = scmp.lt.u32.totalorder %s68_s13, %s202_s0 }
   0x6   :  { %p74_p2 = pnand %p72_p1, %p69_p0 }
   0x8   :  { %77 = shalt.err (!%p74_p2)
}
   0x9   :  { %s78_s18 = scalar_lea.vmem %s16_s10, 256  ;;  %p83_p4 = scmp.lt.s32.totalorder %s16_s10, %s16_s10 }
   0xa   :  { %p79_p3 = scmp.ne.s32.totalorder %s16_s10, %s78_s18  ;;  %p84_p5 = scmp.lt.s32.totalorder %s78_s18, %s78_s18 }
   0xc   :  { %p85_p6 = por %p84_p5, %p83_p4 }
   0xe   :  { %p86_p7 = pnand %p85_p6, %p79_p3 }
  0x10   :  { %89 = shalt.err (!%p86_p7)
}
  0x11   :  { %s141_s19 = smov 128   ;;  %s142_s20 = smov 8  }
  0x12   :  { %21 = dma.hbm_to_vmem [thread:$0]  %s202_s0, 256, %s16_s10, [#allocation3], %s141_s19, %s141_s19, %s142_s20  }
  0x13   :  { %s143_s23 = smov [#allocation5]   ;;  %s90_s27 = scalar_lea.hbm %s203_s1, 128 }
  0x14   :  { %s28_s24 = sshll.u32 %s143_s23, 4  ;;  %p91_p8 = scmp.ne.s32.totalorder %s203_s1, %s90_s27  ;;  %s29_s24 = int_to_ptr.vmem [resolvable:$true] %s28_s24 }
  0x15   :  { %p94_p9 = scmp.lt.u32.totalorder %s90_s27, %s203_s1 }
  0x17   :  { %p96_p10 = pnand %p94_p9, %p91_p8 }
  0x19   :  { %99 = shalt.err (!%p96_p10)
}
  0x1a   :  { %s100_s4 = scalar_lea.vmem %s29_s24, 128  ;;  %p105_p12 = scmp.lt.s32.totalorder %s29_s24, %s29_s24 }
  0x1b   :  { %p101_p11 = scmp.ne.s32.totalorder %s29_s24, %s100_s4  ;;  %p106_p13 = scmp.lt.s32.totalorder %s100_s4, %s100_s4 }
  0x1d   :  { %p107_p0 = por %p106_p13, %p105_p12 }
  0x1f   :  { %p108_p1 = pnand %p107_p0, %p101_p11 }
  0x21   :  { %111 = shalt.err (!%p108_p1)
}
  0x22   :  { %31 = dma.hbm_to_vmem [thread:$0]  %s203_s1, 128, %s29_s24, [#allocation6]  }
  0x23   :  { %134 = dma.done.wait [#allocation3], 256  }
  0x24   :  { %135 = vsyncadd [#allocation3], 4294967040 }
  0x25   :  { %136 = dma.done.wait [#allocation6], 128  }
  0x26   :  { %137 = vsyncadd [#allocation6], 4294967168  ;;  %s144_s6 = smov [#allocation7]   ;;  %v38_v0 = vld [vmem:[#allocation2] sm:$0xff]  ;;  %v40_v1 = vld [vmem:[#allocation5] sm:$0xff] }
  0x27   :  { %s50_s7 = sshll.u32 %s144_s6, 4  ;;  %v39_v2 = vld [vmem:[#allocation2 + $0x8] sm:$0xff]  ;;  %v41_v3 = vadd.f32 %v40_v1, %v38_v0  ;;  %s51_s7 = int_to_ptr.vmem [resolvable:$true] %s50_s7 }
  0x28   :  { %v42_v4 = vadd.f32 %v40_v1, %v39_v2  ;;  %s112_s8 = scalar_lea.vmem %s51_s7, 256  ;;  %p117_p3 = scmp.lt.s32.totalorder %s51_s7, %s51_s7 }
  0x29   :  { %43 = vst [vmem:[#allocation7] sm:$0xff] %v41_v3  ;;  %p113_p2 = scmp.ne.s32.totalorder %s51_s7, %s112_s8  ;;  %p118_p4 = scmp.lt.s32.totalorder %s112_s8, %s112_s8 }
  0x2a   :  { %44 = vst [vmem:[#allocation7 + $0x8] sm:$0xff] %v42_v4 }
  0x2b   :  { %p119_p5 = por %p118_p4, %p117_p3 }
  0x2d   :  { %p120_p6 = pnand %p119_p5, %p113_p2 }
  0x2f   :  { %123 = shalt.err (!%p120_p6)
}
  0x30   :  { %s124_s10 = scalar_lea.hbm %s204_s2, 256 }
  0x31   :  { %p125_p7 = scmp.ne.s32.totalorder %s204_s2, %s124_s10  ;;  %p128_p8 = scmp.lt.u32.totalorder %s124_s10, %s204_s2 }
  0x33   :  { %p130_p9 = pnand %p128_p8, %p125_p7 }
  0x35   :  { %133 = shalt.err (!%p130_p9)
}
  0x36   :  { %56 = dma.vmem_to_hbm [thread:$0]  %s51_s7, 256, %s204_s2, [#allocation4], %s141_s19, %s141_s19, %s142_s20  }
  0x37   :  { %138 = dma.done.wait [#allocation4], 256  }
  0x38   :  { %139 = vsyncadd [#allocation4], 4294967040 }
  0x39   :  { %60 = vsyncpa [#allocation3], 1 }
  0x3a   :  { %61 = vsyncpa [#allocation6], 1 }
  0x3b   :  { %62 = vsyncpa [#allocation4], 1 }

</bundles_post_ra>
